<compile_context>
chip_gen: v5e
topology: v5e:2x2
jax: 0.10.0
libtpu: 0.0.40
codegen_flags: <defaults>
</compile_context>

<pallas_src>
import jax
import jax.numpy as jnp
import numpy as np
from jax import lax
from jax.experimental import pallas as pl
from jax.experimental.pallas import tpu as pltpu

BN_EPS = 1e-5
_VMEM_LIMIT = 32 * 1024 * 1024   # safe on v5e / v6e / v7x; usage here is tiny


def _make_kernels(cin, cout, ow, p_b):
    """Kernel factory closing over static shape parameters.

    Planes ref layout (per batch): (4, cin, p_b) with
      [0] = x[2i,   2j]   [1] = x[2i,   2j+1]
      [2] = x[2i+1, 2j]   [3] = x[2i+1, 2j+1]
    and p_b = OH*OW flattened on the lane axis (p = oh*OW + ow).
    """

    def pool_and_taps(planes_ref):
        q00 = planes_ref[0]
        q01 = planes_ref[1]
        q10 = planes_ref[2]
        q11 = planes_ref[3]

        # MaxPool2d(2,2): elementwise max of the four phase planes.
        pool = jnp.maximum(jnp.maximum(q00, q01), jnp.maximum(q10, q11))

        # Column mask: zero where ow == 0 (left zero-padding of the conv).
        lane = lax.broadcasted_iota(jnp.int32, (1, p_b), 1)
        mask_c = jnp.where(lane % ow == 0, 0.0, 1.0)           # (1, p_b) f32

        def shz(a, k):
            # out[:, p] = a[:, p - k] for p >= k, else 0  (zero-fill shift).
            zero = jnp.zeros((cin, k), jnp.float32)
            return jnp.concatenate([zero, a[:, :p_b - k]], axis=1)

        # Conv tap (kh, kw) at output (oh, ow) reads x[2*oh+kh-1, 2*ow+kw-1].
        taps = (mask_c * shz(q11, ow + 1),   # (0,0): x[2oh-1, 2ow-1]
                shz(q10, ow),                # (0,1): x[2oh-1, 2ow  ]
                shz(q11, ow),                # (0,2): x[2oh-1, 2ow+1]
                mask_c * shz(q01, 1),        # (1,0): x[2oh,   2ow-1]
                q00,                         # (1,1): x[2oh,   2ow  ]
                q01,                         # (1,2): x[2oh,   2ow+1]
                mask_c * shz(q11, 1),        # (2,0): x[2oh+1, 2ow-1]
                q10,                         # (2,1): x[2oh+1, 2ow  ]
                q11)                         # (2,2): x[2oh+1, 2ow+1]
        return pool, taps

    def conv_from_taps(taps, w_ref):
        # w_ref: (9, cout, cin); 9 small MXU matmuls accumulated in f32.
        acc = jnp.dot(w_ref[0], taps[0], preferred_element_type=jnp.float32)
        for t in range(1, 9):
            acc = acc + jnp.dot(w_ref[t], taps[t],
                                preferred_element_type=jnp.float32)
        return acc                                             # (cout, p_b)

    # ---- pass 1: per-channel sum / sum-of-squares (resident accumulators) --
    def stats_kernel(planes_ref, w_ref, b_ref, sum_ref, ssq_ref):
        @pl.when(pl.program_id(1) == 0)
        def _():
            sum_ref[...] = jnp.zeros_like(sum_ref)
            ssq_ref[...] = jnp.zeros_like(ssq_ref)

        pool, taps = pool_and_taps(planes_ref)
        conv = conv_from_taps(taps, w_ref) + b_ref[...]

        ps = jnp.sum(pool, axis=1, keepdims=True)              # (cin, 1)
        cs = jnp.sum(conv, axis=1, keepdims=True)              # (cout, 1)
        pss = jnp.sum(pool * pool, axis=1, keepdims=True)
        css = jnp.sum(conv * conv, axis=1, keepdims=True)

        sum_ref[...] += jnp.concatenate([ps, cs], axis=0)      # (16, 1)
        ssq_ref[...] += jnp.concatenate([pss, css], axis=0)

    # ---- pass 2: recompute pool/conv, BN affine + PReLU, lane-dense store --
    def apply_kernel(planes_ref, w_ref, b_ref, aff_ref, out_ref):
        pool, taps = pool_and_taps(planes_ref)
        conv = conv_from_taps(taps, w_ref) + b_ref[...]

        scale = aff_ref[0]                                     # (16, 1)
        shift = aff_ref[1]
        alpha = aff_ref[2]

        yp = pool * scale[0:cin] + shift[0:cin]
        yc = conv * scale[cin:16] + shift[cin:16]
        out_ref[0:cin, :] = jnp.where(yp >= 0.0, yp, alpha[0:cin] * yp)
        out_ref[cin:16, :] = jnp.where(yc >= 0.0, yc, alpha[cin:16] * yc)

    return stats_kernel, apply_kernel


def initial_block_forward(x_nchw, conv_w, conv_b, gamma, beta, alpha):
    """x_nchw: (N, Cin, H, W) f32 -> (N, 16, H//2, W//2) f32 (NCHW)."""
    N, Cin, H, W = x_nchw.shape
    assert H % 2 == 0 and W % 2 == 0, "even spatial dims assumed (see TODO)"
    Cout = 16 - Cin
    OH, OW = H // 2, W // 2
    Pb = OH * OW

    # ---- glue: stride-2 phase planes, (N, 4, Cin, OH*OW) --------------------
    q = [x_nchw[:, :, r::2, c::2] for r in (0, 1) for c in (0, 1)]
    planes = jnp.stack(q, axis=1).reshape(N, 4, Cin, Pb)

    # conv weights (Cout, Cin, 3, 3) -> (9, Cout, Cin), tap t = 3*kh + kw
    w9 = jnp.transpose(conv_w, (2, 3, 0, 1)).reshape(9, Cout, Cin)
    b_col = conv_b.reshape(Cout, 1)

    stats_kernel, apply_kernel = _make_kernels(Cin, Cout, OW, Pb)

    # ---- pass 1: batch-norm statistics --------------------------------------
    S = 2 if N % 2 == 0 else 1          # megacore split of the reduction (v7x)
    NB = N // S

    planes_spec1 = pl.BlockSpec((None, 4, Cin, Pb),
                                lambda s, j: (s * NB + j, 0, 0, 0))
    w_spec1 = pl.BlockSpec((9, Cout, Cin), lambda s, j: (0, 0, 0))
    b_spec1 = pl.BlockSpec((Cout, 1), lambda s, j: (0, 0))
    acc_spec = pl.BlockSpec((None, 16, 1), lambda s, j: (s, 0, 0))

    part_sum, part_ssq = pl.pallas_call(
        stats_kernel,
        out_shape=(jax.ShapeDtypeStruct((S, 16, 1), jnp.float32),
                   jax.ShapeDtypeStruct((S, 16, 1), jnp.float32)),
        grid=(S, NB),
        in_specs=[planes_spec1, w_spec1, b_spec1],
        out_specs=(acc_spec, acc_spec),
        compiler_params=pltpu.CompilerParams(
            dimension_semantics=("parallel", "arbitrary"),
            vmem_limit_bytes=_VMEM_LIMIT),
    )(planes, w9, b_col)

    # tiny finalize on 16 channels (plain JAX)
    ch_sum = jnp.sum(part_sum, axis=0)                         # (16, 1)
    ch_ssq = jnp.sum(part_ssq, axis=0)
    cnt = float(N * Pb)
    mean = ch_sum / cnt
    # NOTE: E[y^2]-E[y]^2 in f32 (accepted risk; fine for activation-scale data).
    var = jnp.maximum(ch_ssq / cnt - mean * mean, 0.0)
    inv_std = lax.rsqrt(var + BN_EPS)
    scale = gamma.reshape(16, 1) * inv_std
    shift = beta.reshape(16, 1) - mean * scale
    aff = jnp.stack([scale, shift, alpha.reshape(16, 1)], axis=0)   # (3, 16, 1)

    # ---- pass 2: apply BN affine + PReLU, N-major lane-dense output ---------
    planes_spec2 = pl.BlockSpec((None, 4, Cin, Pb), lambda n: (n, 0, 0, 0))
    out_flat = pl.pallas_call(
        apply_kernel,
        out_shape=jax.ShapeDtypeStruct((N, 16, Pb), jnp.float32),
        grid=(N,),
        in_specs=[planes_spec2,
                  pl.BlockSpec((9, Cout, Cin), lambda n: (0, 0, 0)),
                  pl.BlockSpec((Cout, 1), lambda n: (0, 0)),
                  pl.BlockSpec((3, 16, 1), lambda n: (0, 0, 0))],
        out_specs=pl.BlockSpec((None, 16, Pb), lambda n: (n, 0, 0)),
        compiler_params=pltpu.CompilerParams(
            dimension_semantics=("parallel",),
            vmem_limit_bytes=_VMEM_LIMIT),
    )(planes, w9, b_col, aff)

    return out_flat.reshape(N, 16, OH, OW)        # free reshape, already NCHW


def initial_block_reference(x_nchw, conv_w, conv_b, gamma, beta, alpha):
    """Pure-JAX reference mirroring the PyTorch forward (training-mode BN)."""
    N, Cin, H, W = x_nchw.shape
    pooled = x_nchw.reshape(N, Cin, H // 2, 2, W // 2, 2).max(axis=(3, 5))
    conv = lax.conv_general_dilated(
        x_nchw, conv_w, window_strides=(2, 2), padding=((1, 1), (1, 1)),
        dimension_numbers=("NCHW", "OIHW", "NCHW"))
    conv = conv + conv_b[None, :, None, None]
    y = jnp.concatenate([pooled, conv], axis=1)                # (N, 16, OH, OW)
    mean = y.mean(axis=(0, 2, 3), keepdims=True)
    var = ((y - mean) ** 2).mean(axis=(0, 2, 3), keepdims=True)
    yn = (y - mean) * lax.rsqrt(var + BN_EPS)
    yn = gamma[None, :, None, None] * yn + beta[None, :, None, None]
    return jnp.where(yn >= 0, yn, alpha[None, :, None, None] * yn)


if __name__ == "__main__":
    N, Cin, H, W = 2, 4, 16, 16
    Cout = 16 - Cin

    key = jax.random.PRNGKey(0)
    k_x, k_w, k_b, k_g, k_be = jax.random.split(key, 5)

    # x and conv_w are snapped to the bf16 grid so any MXU input truncation is
    # lossless and the 1e-4 check is independent of the f32-matmul mode
    # (accumulation stays f32 either way).
    x = jax.random.normal(k_x, (N, Cin, H, W), dtype=jnp.float32)
    x = x.astype(jnp.bfloat16).astype(jnp.float32)
    conv_w = 0.1 * jax.random.normal(k_w, (Cout, Cin, 3, 3), dtype=jnp.float32)
    conv_w = conv_w.astype(jnp.bfloat16).astype(jnp.float32)
    conv_b = 0.05 * jax.random.normal(k_b, (Cout,), dtype=jnp.float32)
    gamma = 1.0 + 0.1 * jax.random.normal(k_g, (16,), dtype=jnp.float32)
    beta = 0.1 * jax.random.normal(k_be, (16,), dtype=jnp.float32)
    alpha = jnp.full((16,), 0.25, dtype=jnp.float32)   # PReLU default init

    fwd = jax.jit(initial_block_forward)
    out = jax.block_until_ready(fwd(x, conv_w, conv_b, gamma, beta, alpha))
    ref = jax.block_until_ready(
        initial_block_reference(x, conv_w, conv_b, gamma, beta, alpha))

    assert out.shape == (N, 16, H // 2, W // 2)
    np.testing.assert_allclose(np.asarray(out), np.asarray(ref),
                               rtol=1e-4, atol=1e-4)
    print("KERNEL_OK")
</pallas_src>

<mosaic_0001>
module attributes {stable_mosaic.version = 11 : i64} {
  func.func @stats_kernel(%arg0: i32, %arg1: i32, %arg2: memref<1x4x4x64xf32, #tpu.memory_space<vmem>>, %arg3: memref<9x12x4xf32, #tpu.memory_space<vmem>>, %arg4: memref<12x1xf32, #tpu.memory_space<vmem>>, %arg5: memref<1x16x1xf32, #tpu.memory_space<vmem>>, %arg6: memref<1x16x1xf32, #tpu.memory_space<vmem>>) attributes {dimension_semantics = [#tpu.dimension_semantics<parallel>, #tpu.dimension_semantics<arbitrary>], iteration_bounds = array<i64: 2, 1>, scalar_prefetch = 0 : i64, scratch_operands = 0 : i64, tpu.core_type = #tpu.core_type<tc>, window_params = [{transform_indices = @transform_0, window_bounds = array<i64: 1, 4, 4, 64>}, {pipeline_mode = #tpu.pipeline_mode<synchronous>, transform_indices = @transform_1, window_bounds = array<i64: 9, 12, 4>}, {pipeline_mode = #tpu.pipeline_mode<synchronous>, transform_indices = @transform_2, window_bounds = array<i64: 12, 1>}, {transform_indices = @transform_3, window_bounds = array<i64: 1, 16, 1>}, {transform_indices = @transform_4, window_bounds = array<i64: 1, 16, 1>}]} {
    %c0_i32 = arith.constant 0 : i32
    %0 = arith.cmpi eq, %arg1, %c0_i32 : i32
    %1 = arith.extui %0 : i1 to i32
    %c0_i32_0 = arith.constant 0 : i32
    %2 = arith.cmpi ne, %1, %c0_i32_0 : i32
    scf.if %2 {
      %cst_73 = arith.constant 0.000000e+00 : f32
      %119 = vector.broadcast %cst_73 : f32 to vector<16x1xf32>
      %c0_74 = arith.constant 0 : index
      %c0_75 = arith.constant 0 : index
      %c0_76 = arith.constant 0 : index
      %120 = vector.load %arg5[%c0_74, %c0_75, %c0_76] : memref<1x16x1xf32, #tpu.memory_space<vmem>>, vector<1x16x1xf32>
      %121 = vector.shape_cast %120 : vector<1x16x1xf32> to vector<16x1xf32>
      %122 = vector.shape_cast %119 : vector<16x1xf32> to vector<1x16x1xf32>
      tpu.vector_store %arg5[%c0_74, %c0_75, %c0_76], %122 {strides = array<i32>} : memref<1x16x1xf32, #tpu.memory_space<vmem>>, vector<1x16x1xf32>,
      %cst_77 = arith.constant 0.000000e+00 : f32
      %123 = vector.broadcast %cst_77 : f32 to vector<16x1xf32>
      %c0_78 = arith.constant 0 : index
      %c0_79 = arith.constant 0 : index
      %c0_80 = arith.constant 0 : index
      %124 = vector.load %arg6[%c0_78, %c0_79, %c0_80] : memref<1x16x1xf32, #tpu.memory_space<vmem>>, vector<1x16x1xf32>
      %125 = vector.shape_cast %124 : vector<1x16x1xf32> to vector<16x1xf32>
      %126 = vector.shape_cast %123 : vector<16x1xf32> to vector<1x16x1xf32>
      tpu.vector_store %arg6[%c0_78, %c0_79, %c0_80], %126 {strides = array<i32>} : memref<1x16x1xf32, #tpu.memory_space<vmem>>, vector<1x16x1xf32>,
    } else {
    }
    %c0 = arith.constant 0 : index
    %c0_1 = arith.constant 0 : index
    %c0_2 = arith.constant 0 : index
    %c0_3 = arith.constant 0 : index
    %3 = vector.load %arg2[%c0, %c0_1, %c0_2, %c0_3] : memref<1x4x4x64xf32, #tpu.memory_space<vmem>>, vector<1x1x4x64xf32>
    %4 = vector.shape_cast %3 : vector<1x1x4x64xf32> to vector<4x64xf32>
    %c0_4 = arith.constant 0 : index
    %c1 = arith.constant 1 : index
    %c0_5 = arith.constant 0 : index
    %c0_6 = arith.constant 0 : index
    %5 = vector.load %arg2[%c0_4, %c1, %c0_5, %c0_6] : memref<1x4x4x64xf32, #tpu.memory_space<vmem>>, vector<1x1x4x64xf32>
    %6 = vector.shape_cast %5 : vector<1x1x4x64xf32> to vector<4x64xf32>
    %c0_7 = arith.constant 0 : index
    %c2 = arith.constant 2 : index
    %c0_8 = arith.constant 0 : index
    %c0_9 = arith.constant 0 : index
    %7 = vector.load %arg2[%c0_7, %c2, %c0_8, %c0_9] : memref<1x4x4x64xf32, #tpu.memory_space<vmem>>, vector<1x1x4x64xf32>
    %8 = vector.shape_cast %7 : vector<1x1x4x64xf32> to vector<4x64xf32>
    %c0_10 = arith.constant 0 : index
    %c3 = arith.constant 3 : index
    %c0_11 = arith.constant 0 : index
    %c0_12 = arith.constant 0 : index
    %9 = vector.load %arg2[%c0_10, %c3, %c0_11, %c0_12] : memref<1x4x4x64xf32, #tpu.memory_space<vmem>>, vector<1x1x4x64xf32>
    %10 = vector.shape_cast %9 : vector<1x1x4x64xf32> to vector<4x64xf32>
    %11 = arith.maximumf %4, %6 : vector<4x64xf32>
    %12 = arith.maximumf %8, %10 : vector<4x64xf32>
    %13 = arith.maximumf %11, %12 : vector<4x64xf32>
    %14 = tpu.iota {dimensions = array<i32: 1>} : vector<1x64xi32>
    %c8_i32 = arith.constant 8 : i32
    %c0_i32_13 = arith.constant 0 : i32
    %15 = arith.cmpi eq, %c8_i32, %c0_i32_13 : i32
    %c1_i32 = arith.constant 1 : i32
    %16 = arith.select %15, %c1_i32, %c8_i32 : i32
    %17 = vector.broadcast %16 : i32 to vector<1x64xi32>
    %18 = arith.remsi %14, %17 : vector<1x64xi32>
    %c0_i32_14 = arith.constant 0 : i32
    %19 = vector.broadcast %c0_i32_14 : i32 to vector<1x64xi32>
    %20 = arith.cmpi ne, %18, %19 : vector<1x64xi32>
    %c0_i32_15 = arith.constant 0 : i32
    %21 = vector.broadcast %c0_i32_15 : i32 to vector<1x64xi32>
    %22 = arith.cmpi slt, %18, %21 : vector<1x64xi32>
    %c0_i32_16 = arith.constant 0 : i32
    %23 = arith.cmpi slt, %16, %c0_i32_16 : i32
    %24 = vector.broadcast %23 : i1 to vector<1x64xi1>
    %25 = vector.broadcast %24 : vector<1x64xi1> to vector<1x64xi1>
    %26 = arith.xori %22, %25 : vector<1x64xi1>
    %27 = arith.andi %26, %20 : vector<1x64xi1>
    %28 = vector.broadcast %16 : i32 to vector<1x64xi32>
    %29 = arith.addi %18, %28 : vector<1x64xi32>
    %30 = arith.select %27, %29, %18 : vector<1x64xi1>, vector<1x64xi32>
    %c0_i32_17 = arith.constant 0 : i32
    %31 = vector.broadcast %c0_i32_17 : i32 to vector<1x64xi32>
    %32 = arith.cmpi eq, %30, %31 : vector<1x64xi32>
    %cst = arith.constant 0.000000e+00 : f32
    %cst_18 = arith.constant 1.000000e+00 : f32
    %33 = vector.broadcast %cst : f32 to vector<1x64xf32>
    %34 = vector.broadcast %cst_18 : f32 to vector<1x64xf32>
    %35 = arith.select %32, %33, %34 : vector<1x64xi1>, vector<1x64xf32>
    %cst_19 = arith.constant 0.000000e+00 : f32
    %36 = vector.broadcast %cst_19 : f32 to vector<4x9xf32>
    %37 = vector.extract_strided_slice %10 {offsets = [0, 0], sizes = [4, 55], strides = [1, 1]} : vector<4x64xf32> to vector<4x55xf32>
    %38 = tpu.concatenate %36, %37 in 1 : vector<4x9xf32>, vector<4x55xf32> -> vector<4x64xf32>
    %39 = vector.broadcast %35 : vector<1x64xf32> to vector<4x64xf32>
    %40 = arith.mulf %39, %38 : vector<4x64xf32>
    %cst_20 = arith.constant 0.000000e+00 : f32
    %41 = vector.broadcast %cst_20 : f32 to vector<4x8xf32>
    %42 = vector.extract_strided_slice %8 {offsets = [0, 0], sizes = [4, 56], strides = [1, 1]} : vector<4x64xf32> to vector<4x56xf32>
    %43 = tpu.concatenate %41, %42 in 1 : vector<4x8xf32>, vector<4x56xf32> -> vector<4x64xf32>
    %cst_21 = arith.constant 0.000000e+00 : f32
    %44 = vector.broadcast %cst_21 : f32 to vector<4x8xf32>
    %45 = vector.extract_strided_slice %10 {offsets = [0, 0], sizes = [4, 56], strides = [1, 1]} : vector<4x64xf32> to vector<4x56xf32>
    %46 = tpu.concatenate %44, %45 in 1 : vector<4x8xf32>, vector<4x56xf32> -> vector<4x64xf32>
    %cst_22 = arith.constant 0.000000e+00 : f32
    %47 = vector.broadcast %cst_22 : f32 to vector<4x1xf32>
    %48 = vector.extract_strided_slice %6 {offsets = [0, 0], sizes = [4, 63], strides = [1, 1]} : vector<4x64xf32> to vector<4x63xf32>
    %49 = tpu.concatenate %47, %48 in 1 : vector<4x1xf32>, vector<4x63xf32> -> vector<4x64xf32>
    %50 = vector.broadcast %35 : vector<1x64xf32> to vector<4x64xf32>
    %51 = arith.mulf %50, %49 : vector<4x64xf32>
    %cst_23 = arith.constant 0.000000e+00 : f32
    %52 = vector.broadcast %cst_23 : f32 to vector<4x1xf32>
    %53 = vector.extract_strided_slice %10 {offsets = [0, 0], sizes = [4, 63], strides = [1, 1]} : vector<4x64xf32> to vector<4x63xf32>
    %54 = tpu.concatenate %52, %53 in 1 : vector<4x1xf32>, vector<4x63xf32> -> vector<4x64xf32>
    %55 = vector.broadcast %35 : vector<1x64xf32> to vector<4x64xf32>
    %56 = arith.mulf %55, %54 : vector<4x64xf32>
    %c0_24 = arith.constant 0 : index
    %c0_25 = arith.constant 0 : index
    %c0_26 = arith.constant 0 : index
    %57 = vector.load %arg3[%c0_24, %c0_25, %c0_26] : memref<9x12x4xf32, #tpu.memory_space<vmem>>, vector<1x12x4xf32>
    %58 = vector.shape_cast %57 : vector<1x12x4xf32> to vector<12x4xf32>
    %cst_27 = arith.constant dense<0.000000e+00> : vector<12x64xf32>
    %59 = tpu.matmul %58, %40, %cst_27 {dimension_numbers = #tpu.dot_dimension_numbers<[1], [0], [0], [1], [0, 0, 1, 1], [], []>} : vector<12x4xf32>, vector<4x64xf32>, vector<12x64xf32> -> vector<12x64xf32>
    %c1_28 = arith.constant 1 : index
    %c0_29 = arith.constant 0 : index
    %c0_30 = arith.constant 0 : index
    %60 = vector.load %arg3[%c1_28, %c0_29, %c0_30] : memref<9x12x4xf32, #tpu.memory_space<vmem>>, vector<1x12x4xf32>
    %61 = vector.shape_cast %60 : vector<1x12x4xf32> to vector<12x4xf32>
    %cst_31 = arith.constant dense<0.000000e+00> : vector<12x64xf32>
    %62 = tpu.matmul %61, %43, %cst_31 {dimension_numbers = #tpu.dot_dimension_numbers<[1], [0], [0], [1], [0, 0, 1, 1], [], []>} : vector<12x4xf32>, vector<4x64xf32>, vector<12x64xf32> -> vector<12x64xf32>
    %63 = arith.addf %59, %62 : vector<12x64xf32>
    %c2_32 = arith.constant 2 : index
    %c0_33 = arith.constant 0 : index
    %c0_34 = arith.constant 0 : index
    %64 = vector.load %arg3[%c2_32, %c0_33, %c0_34] : memref<9x12x4xf32, #tpu.memory_space<vmem>>, vector<1x12x4xf32>
    %65 = vector.shape_cast %64 : vector<1x12x4xf32> to vector<12x4xf32>
    %cst_35 = arith.constant dense<0.000000e+00> : vector<12x64xf32>
    %66 = tpu.matmul %65, %46, %cst_35 {dimension_numbers = #tpu.dot_dimension_numbers<[1], [0], [0], [1], [0, 0, 1, 1], [], []>} : vector<12x4xf32>, vector<4x64xf32>, vector<12x64xf32> -> vector<12x64xf32>
    %67 = arith.addf %63, %66 : vector<12x64xf32>
    %c3_36 = arith.constant 3 : index
    %c0_37 = arith.constant 0 : index
    %c0_38 = arith.constant 0 : index
    %68 = vector.load %arg3[%c3_36, %c0_37, %c0_38] : memref<9x12x4xf32, #tpu.memory_space<vmem>>, vector<1x12x4xf32>
    %69 = vector.shape_cast %68 : vector<1x12x4xf32> to vector<12x4xf32>
    %cst_39 = arith.constant dense<0.000000e+00> : vector<12x64xf32>
    %70 = tpu.matmul %69, %51, %cst_39 {dimension_numbers = #tpu.dot_dimension_numbers<[1], [0], [0], [1], [0, 0, 1, 1], [], []>} : vector<12x4xf32>, vector<4x64xf32>, vector<12x64xf32> -> vector<12x64xf32>
    %71 = arith.addf %67, %70 : vector<12x64xf32>
    %c4 = arith.constant 4 : index
    %c0_40 = arith.constant 0 : index
    %c0_41 = arith.constant 0 : index
    %72 = vector.load %arg3[%c4, %c0_40, %c0_41] : memref<9x12x4xf32, #tpu.memory_space<vmem>>, vector<1x12x4xf32>
    %73 = vector.shape_cast %72 : vector<1x12x4xf32> to vector<12x4xf32>
    %cst_42 = arith.constant dense<0.000000e+00> : vector<12x64xf32>
    %74 = tpu.matmul %73, %4, %cst_42 {dimension_numbers = #tpu.dot_dimension_numbers<[1], [0], [0], [1], [0, 0, 1, 1], [], []>} : vector<12x4xf32>, vector<4x64xf32>, vector<12x64xf32> -> vector<12x64xf32>
    %75 = arith.addf %71, %74 : vector<12x64xf32>
    %c5 = arith.constant 5 : index
    %c0_43 = arith.constant 0 : index
    %c0_44 = arith.constant 0 : index
    %76 = vector.load %arg3[%c5, %c0_43, %c0_44] : memref<9x12x4xf32, #tpu.memory_space<vmem>>, vector<1x12x4xf32>
    %77 = vector.shape_cast %76 : vector<1x12x4xf32> to vector<12x4xf32>
    %cst_45 = arith.constant dense<0.000000e+00> : vector<12x64xf32>
    %78 = tpu.matmul %77, %6, %cst_45 {dimension_numbers = #tpu.dot_dimension_numbers<[1], [0], [0], [1], [0, 0, 1, 1], [], []>} : vector<12x4xf32>, vector<4x64xf32>, vector<12x64xf32> -> vector<12x64xf32>
    %79 = arith.addf %75, %78 : vector<12x64xf32>
    %c6 = arith.constant 6 : index
    %c0_46 = arith.constant 0 : index
    %c0_47 = arith.constant 0 : index
    %80 = vector.load %arg3[%c6, %c0_46, %c0_47] : memref<9x12x4xf32, #tpu.memory_space<vmem>>, vector<1x12x4xf32>
    %81 = vector.shape_cast %80 : vector<1x12x4xf32> to vector<12x4xf32>
    %cst_48 = arith.constant dense<0.000000e+00> : vector<12x64xf32>
    %82 = tpu.matmul %81, %56, %cst_48 {dimension_numbers = #tpu.dot_dimension_numbers<[1], [0], [0], [1], [0, 0, 1, 1], [], []>} : vector<12x4xf32>, vector<4x64xf32>, vector<12x64xf32> -> vector<12x64xf32>
    %83 = arith.addf %79, %82 : vector<12x64xf32>
    %c7 = arith.constant 7 : index
    %c0_49 = arith.constant 0 : index
    %c0_50 = arith.constant 0 : index
    %84 = vector.load %arg3[%c7, %c0_49, %c0_50] : memref<9x12x4xf32, #tpu.memory_space<vmem>>, vector<1x12x4xf32>
    %85 = vector.shape_cast %84 : vector<1x12x4xf32> to vector<12x4xf32>
    %cst_51 = arith.constant dense<0.000000e+00> : vector<12x64xf32>
    %86 = tpu.matmul %85, %8, %cst_51 {dimension_numbers = #tpu.dot_dimension_numbers<[1], [0], [0], [1], [0, 0, 1, 1], [], []>} : vector<12x4xf32>, vector<4x64xf32>, vector<12x64xf32> -> vector<12x64xf32>
    %87 = arith.addf %83, %86 : vector<12x64xf32>
    %c8 = arith.constant 8 : index
    %c0_52 = arith.constant 0 : index
    %c0_53 = arith.constant 0 : index
    %88 = vector.load %arg3[%c8, %c0_52, %c0_53] : memref<9x12x4xf32, #tpu.memory_space<vmem>>, vector<1x12x4xf32>
    %89 = vector.shape_cast %88 : vector<1x12x4xf32> to vector<12x4xf32>
    %cst_54 = arith.constant dense<0.000000e+00> : vector<12x64xf32>
    %90 = tpu.matmul %89, %10, %cst_54 {dimension_numbers = #tpu.dot_dimension_numbers<[1], [0], [0], [1], [0, 0, 1, 1], [], []>} : vector<12x4xf32>, vector<4x64xf32>, vector<12x64xf32> -> vector<12x64xf32>
    %91 = arith.addf %87, %90 : vector<12x64xf32>
    %c0_55 = arith.constant 0 : index
    %c0_56 = arith.constant 0 : index
    %92 = vector.load %arg4[%c0_55, %c0_56] : memref<12x1xf32, #tpu.memory_space<vmem>>, vector<12x1xf32>
    %93 = vector.broadcast %92 : vector<12x1xf32> to vector<12x64xf32>
    %94 = arith.addf %91, %93 : vector<12x64xf32>
    %cst_57 = arith.constant dense<0.000000e+00> : vector<4xf32>
    %95 = vector.multi_reduction <add>, %13, %cst_57 [1] : vector<4x64xf32> to vector<4xf32>
    %96 = vector.shape_cast %95 : vector<4xf32> to vector<4x1xf32>
    %cst_58 = arith.constant dense<0.000000e+00> : vector<12xf32>
    %97 = vector.multi_reduction <add>, %94, %cst_58 [1] : vector<12x64xf32> to vector<12xf32>
    %98 = vector.shape_cast %97 : vector<12xf32> to vector<12x1xf32>
    %99 = arith.mulf %13, %13 : vector<4x64xf32>
    %cst_59 = arith.constant dense<0.000000e+00> : vector<4xf32>
    %100 = vector.multi_reduction <add>, %99, %cst_59 [1] : vector<4x64xf32> to vector<4xf32>
    %101 = vector.shape_cast %100 : vector<4xf32> to vector<4x1xf32>
    %102 = arith.mulf %94, %94 : vector<12x64xf32>
    %cst_60 = arith.constant dense<0.000000e+00> : vector<12xf32>
    %103 = vector.multi_reduction <add>, %102, %cst_60 [1] : vector<12x64xf32> to vector<12xf32>
    %104 = vector.shape_cast %103 : vector<12xf32> to vector<12x1xf32>
    %c0_61 = arith.constant 0 : index
    %c0_62 = arith.constant 0 : index
    %c0_63 = arith.constant 0 : index
    %105 = vector.load %arg5[%c0_61, %c0_62, %c0_63] : memref<1x16x1xf32, #tpu.memory_space<vmem>>, vector<1x16x1xf32>
    %106 = vector.shape_cast %105 : vector<1x16x1xf32> to vector<16x1xf32>
    %107 = tpu.concatenate %96, %98 in 0 : vector<4x1xf32>, vector<12x1xf32> -> vector<16x1xf32>
    %108 = arith.addf %106, %107 : vector<16x1xf32>
    %c0_64 = arith.constant 0 : index
    %c0_65 = arith.constant 0 : index
    %c0_66 = arith.constant 0 : index
    %109 = vector.load %arg5[%c0_64, %c0_65, %c0_66] : memref<1x16x1xf32, #tpu.memory_space<vmem>>, vector<1x16x1xf32>
    %110 = vector.shape_cast %109 : vector<1x16x1xf32> to vector<16x1xf32>
    %111 = vector.shape_cast %108 : vector<16x1xf32> to vector<1x16x1xf32>
    tpu.vector_store %arg5[%c0_64, %c0_65, %c0_66], %111 {strides = array<i32>} : memref<1x16x1xf32, #tpu.memory_space<vmem>>, vector<1x16x1xf32>,
    %c0_67 = arith.constant 0 : index
    %c0_68 = arith.constant 0 : index
    %c0_69 = arith.constant 0 : index
    %112 = vector.load %arg6[%c0_67, %c0_68, %c0_69] : memref<1x16x1xf32, #tpu.memory_space<vmem>>, vector<1x16x1xf32>
    %113 = vector.shape_cast %112 : vector<1x16x1xf32> to vector<16x1xf32>
    %114 = tpu.concatenate %101, %104 in 0 : vector<4x1xf32>, vector<12x1xf32> -> vector<16x1xf32>
    %115 = arith.addf %113, %114 : vector<16x1xf32>
    %c0_70 = arith.constant 0 : index
    %c0_71 = arith.constant 0 : index
    %c0_72 = arith.constant 0 : index
    %116 = vector.load %arg6[%c0_70, %c0_71, %c0_72] : memref<1x16x1xf32, #tpu.memory_space<vmem>>, vector<1x16x1xf32>
    %117 = vector.shape_cast %116 : vector<1x16x1xf32> to vector<16x1xf32>
    %118 = vector.shape_cast %115 : vector<16x1xf32> to vector<1x16x1xf32>
    tpu.vector_store %arg6[%c0_70, %c0_71, %c0_72], %118 {strides = array<i32>} : memref<1x16x1xf32, #tpu.memory_space<vmem>>, vector<1x16x1xf32>,
    return
  }
  func.func @transform_0(%arg0: i32, %arg1: i32) -> (i32, i32, i32, i32) {
    %c1_i32 = arith.constant 1 : i32
    %0 = arith.muli %arg0, %c1_i32 : i32
    %1 = arith.addi %0, %arg1 : i32
    %c0_i32 = arith.constant 0 : i32
    %c0_i32_0 = arith.constant 0 : i32
    %c0_i32_1 = arith.constant 0 : i32
    %c0_i32_2 = arith.constant 0 : i32
    return %1, %c0_i32, %c0_i32_0, %c0_i32_1 : i32, i32, i32, i32
  }
  func.func @transform_1(%arg0: i32, %arg1: i32) -> (i32, i32, i32) {
    %c0_i32 = arith.constant 0 : i32
    %c0_i32_0 = arith.constant 0 : i32
    %c0_i32_1 = arith.constant 0 : i32
    %c0_i32_2 = arith.constant 0 : i32
    return %c0_i32, %c0_i32_0, %c0_i32_1 : i32, i32, i32
  }
  func.func @transform_2(%arg0: i32, %arg1: i32) -> (i32, i32) {
    %c0_i32 = arith.constant 0 : i32
    %c0_i32_0 = arith.constant 0 : i32
    %c0_i32_1 = arith.constant 0 : i32
    return %c0_i32, %c0_i32_0 : i32, i32
  }
  func.func @transform_3(%arg0: i32, %arg1: i32) -> (i32, i32, i32) {
    %c0_i32 = arith.constant 0 : i32
    %c0_i32_0 = arith.constant 0 : i32
    %c0_i32_1 = arith.constant 0 : i32
    return %arg0, %c0_i32, %c0_i32_0 : i32, i32, i32
  }
  func.func @transform_4(%arg0: i32, %arg1: i32) -> (i32, i32, i32) {
    %c0_i32 = arith.constant 0 : i32
    %c0_i32_0 = arith.constant 0 : i32
    %c0_i32_1 = arith.constant 0 : i32
    return %arg0, %c0_i32, %c0_i32_0 : i32, i32, i32
  }
}

module attributes {stable_mosaic.version = 11 : i64} {
  func.func @apply_kernel(%arg0: i32, %arg1: memref<1x4x4x64xf32, #tpu.memory_space<vmem>>, %arg2: memref<9x12x4xf32, #tpu.memory_space<vmem>>, %arg3: memref<12x1xf32, #tpu.memory_space<vmem>>, %arg4: memref<3x16x1xf32, #tpu.memory_space<vmem>>, %arg5: memref<1x16x64xf32, #tpu.memory_space<vmem>>) attributes {dimension_semantics = [#tpu.dimension_semantics<parallel>], iteration_bounds = array<i64: 2>, scalar_prefetch = 0 : i64, scratch_operands = 0 : i64, tpu.core_type = #tpu.core_type<tc>, window_params = [{transform_indices = @transform_0, window_bounds = array<i64: 1, 4, 4, 64>}, {pipeline_mode = #tpu.pipeline_mode<synchronous>, transform_indices = @transform_1, window_bounds = array<i64: 9, 12, 4>}, {pipeline_mode = #tpu.pipeline_mode<synchronous>, transform_indices = @transform_2, window_bounds = array<i64: 12, 1>}, {pipeline_mode = #tpu.pipeline_mode<synchronous>, transform_indices = @transform_3, window_bounds = array<i64: 3, 16, 1>}, {transform_indices = @transform_4, window_bounds = array<i64: 1, 16, 64>}]} {
    %c0 = arith.constant 0 : index
    %c0_0 = arith.constant 0 : index
    %c0_1 = arith.constant 0 : index
    %c0_2 = arith.constant 0 : index
    %0 = vector.load %arg1[%c0, %c0_0, %c0_1, %c0_2] : memref<1x4x4x64xf32, #tpu.memory_space<vmem>>, vector<1x1x4x64xf32>
    %1 = vector.shape_cast %0 : vector<1x1x4x64xf32> to vector<4x64xf32>
    %c0_3 = arith.constant 0 : index
    %c1 = arith.constant 1 : index
    %c0_4 = arith.constant 0 : index
    %c0_5 = arith.constant 0 : index
    %2 = vector.load %arg1[%c0_3, %c1, %c0_4, %c0_5] : memref<1x4x4x64xf32, #tpu.memory_space<vmem>>, vector<1x1x4x64xf32>
    %3 = vector.shape_cast %2 : vector<1x1x4x64xf32> to vector<4x64xf32>
    %c0_6 = arith.constant 0 : index
    %c2 = arith.constant 2 : index
    %c0_7 = arith.constant 0 : index
    %c0_8 = arith.constant 0 : index
    %4 = vector.load %arg1[%c0_6, %c2, %c0_7, %c0_8] : memref<1x4x4x64xf32, #tpu.memory_space<vmem>>, vector<1x1x4x64xf32>
    %5 = vector.shape_cast %4 : vector<1x1x4x64xf32> to vector<4x64xf32>
    %c0_9 = arith.constant 0 : index
    %c3 = arith.constant 3 : index
    %c0_10 = arith.constant 0 : index
    %c0_11 = arith.constant 0 : index
    %6 = vector.load %arg1[%c0_9, %c3, %c0_10, %c0_11] : memref<1x4x4x64xf32, #tpu.memory_space<vmem>>, vector<1x1x4x64xf32>
    %7 = vector.shape_cast %6 : vector<1x1x4x64xf32> to vector<4x64xf32>
    %8 = arith.maximumf %1, %3 : vector<4x64xf32>
    %9 = arith.maximumf %5, %7 : vector<4x64xf32>
    %10 = arith.maximumf %8, %9 : vector<4x64xf32>
    %11 = tpu.iota {dimensions = array<i32: 1>} : vector<1x64xi32>
    %c8_i32 = arith.constant 8 : i32
    %c0_i32 = arith.constant 0 : i32
    %12 = arith.cmpi eq, %c8_i32, %c0_i32 : i32
    %c1_i32 = arith.constant 1 : i32
    %13 = arith.select %12, %c1_i32, %c8_i32 : i32
    %14 = vector.broadcast %13 : i32 to vector<1x64xi32>
    %15 = arith.remsi %11, %14 : vector<1x64xi32>
    %c0_i32_12 = arith.constant 0 : i32
    %16 = vector.broadcast %c0_i32_12 : i32 to vector<1x64xi32>
    %17 = arith.cmpi ne, %15, %16 : vector<1x64xi32>
    %c0_i32_13 = arith.constant 0 : i32
    %18 = vector.broadcast %c0_i32_13 : i32 to vector<1x64xi32>
    %19 = arith.cmpi slt, %15, %18 : vector<1x64xi32>
    %c0_i32_14 = arith.constant 0 : i32
    %20 = arith.cmpi slt, %13, %c0_i32_14 : i32
    %21 = vector.broadcast %20 : i1 to vector<1x64xi1>
    %22 = vector.broadcast %21 : vector<1x64xi1> to vector<1x64xi1>
    %23 = arith.xori %19, %22 : vector<1x64xi1>
    %24 = arith.andi %23, %17 : vector<1x64xi1>
    %25 = vector.broadcast %13 : i32 to vector<1x64xi32>
    %26 = arith.addi %15, %25 : vector<1x64xi32>
    %27 = arith.select %24, %26, %15 : vector<1x64xi1>, vector<1x64xi32>
    %c0_i32_15 = arith.constant 0 : i32
    %28 = vector.broadcast %c0_i32_15 : i32 to vector<1x64xi32>
    %29 = arith.cmpi eq, %27, %28 : vector<1x64xi32>
    %cst = arith.constant 0.000000e+00 : f32
    %cst_16 = arith.constant 1.000000e+00 : f32
    %30 = vector.broadcast %cst : f32 to vector<1x64xf32>
    %31 = vector.broadcast %cst_16 : f32 to vector<1x64xf32>
    %32 = arith.select %29, %30, %31 : vector<1x64xi1>, vector<1x64xf32>
    %cst_17 = arith.constant 0.000000e+00 : f32
    %33 = vector.broadcast %cst_17 : f32 to vector<4x9xf32>
    %34 = vector.extract_strided_slice %7 {offsets = [0, 0], sizes = [4, 55], strides = [1, 1]} : vector<4x64xf32> to vector<4x55xf32>
    %35 = tpu.concatenate %33, %34 in 1 : vector<4x9xf32>, vector<4x55xf32> -> vector<4x64xf32>
    %36 = vector.broadcast %32 : vector<1x64xf32> to vector<4x64xf32>
    %37 = arith.mulf %36, %35 : vector<4x64xf32>
    %cst_18 = arith.constant 0.000000e+00 : f32
    %38 = vector.broadcast %cst_18 : f32 to vector<4x8xf32>
    %39 = vector.extract_strided_slice %5 {offsets = [0, 0], sizes = [4, 56], strides = [1, 1]} : vector<4x64xf32> to vector<4x56xf32>
    %40 = tpu.concatenate %38, %39 in 1 : vector<4x8xf32>, vector<4x56xf32> -> vector<4x64xf32>
    %cst_19 = arith.constant 0.000000e+00 : f32
    %41 = vector.broadcast %cst_19 : f32 to vector<4x8xf32>
    %42 = vector.extract_strided_slice %7 {offsets = [0, 0], sizes = [4, 56], strides = [1, 1]} : vector<4x64xf32> to vector<4x56xf32>
    %43 = tpu.concatenate %41, %42 in 1 : vector<4x8xf32>, vector<4x56xf32> -> vector<4x64xf32>
    %cst_20 = arith.constant 0.000000e+00 : f32
    %44 = vector.broadcast %cst_20 : f32 to vector<4x1xf32>
    %45 = vector.extract_strided_slice %3 {offsets = [0, 0], sizes = [4, 63], strides = [1, 1]} : vector<4x64xf32> to vector<4x63xf32>
    %46 = tpu.concatenate %44, %45 in 1 : vector<4x1xf32>, vector<4x63xf32> -> vector<4x64xf32>
    %47 = vector.broadcast %32 : vector<1x64xf32> to vector<4x64xf32>
    %48 = arith.mulf %47, %46 : vector<4x64xf32>
    %cst_21 = arith.constant 0.000000e+00 : f32
    %49 = vector.broadcast %cst_21 : f32 to vector<4x1xf32>
    %50 = vector.extract_strided_slice %7 {offsets = [0, 0], sizes = [4, 63], strides = [1, 1]} : vector<4x64xf32> to vector<4x63xf32>
    %51 = tpu.concatenate %49, %50 in 1 : vector<4x1xf32>, vector<4x63xf32> -> vector<4x64xf32>
    %52 = vector.broadcast %32 : vector<1x64xf32> to vector<4x64xf32>
    %53 = arith.mulf %52, %51 : vector<4x64xf32>
    %c0_22 = arith.constant 0 : index
    %c0_23 = arith.constant 0 : index
    %c0_24 = arith.constant 0 : index
    %54 = vector.load %arg2[%c0_22, %c0_23, %c0_24] : memref<9x12x4xf32, #tpu.memory_space<vmem>>, vector<1x12x4xf32>
    %55 = vector.shape_cast %54 : vector<1x12x4xf32> to vector<12x4xf32>
    %cst_25 = arith.constant dense<0.000000e+00> : vector<12x64xf32>
    %56 = tpu.matmul %55, %37, %cst_25 {dimension_numbers = #tpu.dot_dimension_numbers<[1], [0], [0], [1], [0, 0, 1, 1], [], []>} : vector<12x4xf32>, vector<4x64xf32>, vector<12x64xf32> -> vector<12x64xf32>
    %c1_26 = arith.constant 1 : index
    %c0_27 = arith.constant 0 : index
    %c0_28 = arith.constant 0 : index
    %57 = vector.load %arg2[%c1_26, %c0_27, %c0_28] : memref<9x12x4xf32, #tpu.memory_space<vmem>>, vector<1x12x4xf32>
    %58 = vector.shape_cast %57 : vector<1x12x4xf32> to vector<12x4xf32>
    %cst_29 = arith.constant dense<0.000000e+00> : vector<12x64xf32>
    %59 = tpu.matmul %58, %40, %cst_29 {dimension_numbers = #tpu.dot_dimension_numbers<[1], [0], [0], [1], [0, 0, 1, 1], [], []>} : vector<12x4xf32>, vector<4x64xf32>, vector<12x64xf32> -> vector<12x64xf32>
    %60 = arith.addf %56, %59 : vector<12x64xf32>
    %c2_30 = arith.constant 2 : index
    %c0_31 = arith.constant 0 : index
    %c0_32 = arith.constant 0 : index
    %61 = vector.load %arg2[%c2_30, %c0_31, %c0_32] : memref<9x12x4xf32, #tpu.memory_space<vmem>>, vector<1x12x4xf32>
    %62 = vector.shape_cast %61 : vector<1x12x4xf32> to vector<12x4xf32>
    %cst_33 = arith.constant dense<0.000000e+00> : vector<12x64xf32>
    %63 = tpu.matmul %62, %43, %cst_33 {dimension_numbers = #tpu.dot_dimension_numbers<[1], [0], [0], [1], [0, 0, 1, 1], [], []>} : vector<12x4xf32>, vector<4x64xf32>, vector<12x64xf32> -> vector<12x64xf32>
    %64 = arith.addf %60, %63 : vector<12x64xf32>
    %c3_34 = arith.constant 3 : index
    %c0_35 = arith.constant 0 : index
    %c0_36 = arith.constant 0 : index
    %65 = vector.load %arg2[%c3_34, %c0_35, %c0_36] : memref<9x12x4xf32, #tpu.memory_space<vmem>>, vector<1x12x4xf32>
    %66 = vector.shape_cast %65 : vector<1x12x4xf32> to vector<12x4xf32>
    %cst_37 = arith.constant dense<0.000000e+00> : vector<12x64xf32>
    %67 = tpu.matmul %66, %48, %cst_37 {dimension_numbers = #tpu.dot_dimension_numbers<[1], [0], [0], [1], [0, 0, 1, 1], [], []>} : vector<12x4xf32>, vector<4x64xf32>, vector<12x64xf32> -> vector<12x64xf32>
    %68 = arith.addf %64, %67 : vector<12x64xf32>
    %c4 = arith.constant 4 : index
    %c0_38 = arith.constant 0 : index
    %c0_39 = arith.constant 0 : index
    %69 = vector.load %arg2[%c4, %c0_38, %c0_39] : memref<9x12x4xf32, #tpu.memory_space<vmem>>, vector<1x12x4xf32>
    %70 = vector.shape_cast %69 : vector<1x12x4xf32> to vector<12x4xf32>
    %cst_40 = arith.constant dense<0.000000e+00> : vector<12x64xf32>
    %71 = tpu.matmul %70, %1, %cst_40 {dimension_numbers = #tpu.dot_dimension_numbers<[1], [0], [0], [1], [0, 0, 1, 1], [], []>} : vector<12x4xf32>, vector<4x64xf32>, vector<12x64xf32> -> vector<12x64xf32>
    %72 = arith.addf %68, %71 : vector<12x64xf32>
    %c5 = arith.constant 5 : index
    %c0_41 = arith.constant 0 : index
    %c0_42 = arith.constant 0 : index
    %73 = vector.load %arg2[%c5, %c0_41, %c0_42] : memref<9x12x4xf32, #tpu.memory_space<vmem>>, vector<1x12x4xf32>
    %74 = vector.shape_cast %73 : vector<1x12x4xf32> to vector<12x4xf32>
    %cst_43 = arith.constant dense<0.000000e+00> : vector<12x64xf32>
    %75 = tpu.matmul %74, %3, %cst_43 {dimension_numbers = #tpu.dot_dimension_numbers<[1], [0], [0], [1], [0, 0, 1, 1], [], []>} : vector<12x4xf32>, vector<4x64xf32>, vector<12x64xf32> -> vector<12x64xf32>
    %76 = arith.addf %72, %75 : vector<12x64xf32>
    %c6 = arith.constant 6 : index
    %c0_44 = arith.constant 0 : index
    %c0_45 = arith.constant 0 : index
    %77 = vector.load %arg2[%c6, %c0_44, %c0_45] : memref<9x12x4xf32, #tpu.memory_space<vmem>>, vector<1x12x4xf32>
    %78 = vector.shape_cast %77 : vector<1x12x4xf32> to vector<12x4xf32>
    %cst_46 = arith.constant dense<0.000000e+00> : vector<12x64xf32>
    %79 = tpu.matmul %78, %53, %cst_46 {dimension_numbers = #tpu.dot_dimension_numbers<[1], [0], [0], [1], [0, 0, 1, 1], [], []>} : vector<12x4xf32>, vector<4x64xf32>, vector<12x64xf32> -> vector<12x64xf32>
    %80 = arith.addf %76, %79 : vector<12x64xf32>
    %c7 = arith.constant 7 : index
    %c0_47 = arith.constant 0 : index
    %c0_48 = arith.constant 0 : index
    %81 = vector.load %arg2[%c7, %c0_47, %c0_48] : memref<9x12x4xf32, #tpu.memory_space<vmem>>, vector<1x12x4xf32>
    %82 = vector.shape_cast %81 : vector<1x12x4xf32> to vector<12x4xf32>
    %cst_49 = arith.constant dense<0.000000e+00> : vector<12x64xf32>
    %83 = tpu.matmul %82, %5, %cst_49 {dimension_numbers = #tpu.dot_dimension_numbers<[1], [0], [0], [1], [0, 0, 1, 1], [], []>} : vector<12x4xf32>, vector<4x64xf32>, vector<12x64xf32> -> vector<12x64xf32>
    %84 = arith.addf %80, %83 : vector<12x64xf32>
    %c8 = arith.constant 8 : index
    %c0_50 = arith.constant 0 : index
    %c0_51 = arith.constant 0 : index
    %85 = vector.load %arg2[%c8, %c0_50, %c0_51] : memref<9x12x4xf32, #tpu.memory_space<vmem>>, vector<1x12x4xf32>
    %86 = vector.shape_cast %85 : vector<1x12x4xf32> to vector<12x4xf32>
    %cst_52 = arith.constant dense<0.000000e+00> : vector<12x64xf32>
    %87 = tpu.matmul %86, %7, %cst_52 {dimension_numbers = #tpu.dot_dimension_numbers<[1], [0], [0], [1], [0, 0, 1, 1], [], []>} : vector<12x4xf32>, vector<4x64xf32>, vector<12x64xf32> -> vector<12x64xf32>
    %88 = arith.addf %84, %87 : vector<12x64xf32>
    %c0_53 = arith.constant 0 : index
    %c0_54 = arith.constant 0 : index
    %89 = vector.load %arg3[%c0_53, %c0_54] : memref<12x1xf32, #tpu.memory_space<vmem>>, vector<12x1xf32>
    %90 = vector.broadcast %89 : vector<12x1xf32> to vector<12x64xf32>
    %91 = arith.addf %88, %90 : vector<12x64xf32>
    %c0_55 = arith.constant 0 : index
    %c0_56 = arith.constant 0 : index
    %c0_57 = arith.constant 0 : index
    %92 = vector.load %arg4[%c0_55, %c0_56, %c0_57] : memref<3x16x1xf32, #tpu.memory_space<vmem>>, vector<1x16x1xf32>
    %93 = vector.shape_cast %92 : vector<1x16x1xf32> to vector<16x1xf32>
    %c1_58 = arith.constant 1 : index
    %c0_59 = arith.constant 0 : index
    %c0_60 = arith.constant 0 : index
    %94 = vector.load %arg4[%c1_58, %c0_59, %c0_60] : memref<3x16x1xf32, #tpu.memory_space<vmem>>, vector<1x16x1xf32>
    %95 = vector.shape_cast %94 : vector<1x16x1xf32> to vector<16x1xf32>
    %c2_61 = arith.constant 2 : index
    %c0_62 = arith.constant 0 : index
    %c0_63 = arith.constant 0 : index
    %96 = vector.load %arg4[%c2_61, %c0_62, %c0_63] : memref<3x16x1xf32, #tpu.memory_space<vmem>>, vector<1x16x1xf32>
    %97 = vector.shape_cast %96 : vector<1x16x1xf32> to vector<16x1xf32>
    %98 = vector.extract_strided_slice %93 {offsets = [0, 0], sizes = [4, 1], strides = [1, 1]} : vector<16x1xf32> to vector<4x1xf32>
    %99 = vector.broadcast %98 : vector<4x1xf32> to vector<4x64xf32>
    %100 = arith.mulf %10, %99 : vector<4x64xf32>
    %101 = vector.extract_strided_slice %95 {offsets = [0, 0], sizes = [4, 1], strides = [1, 1]} : vector<16x1xf32> to vector<4x1xf32>
    %102 = vector.broadcast %101 : vector<4x1xf32> to vector<4x64xf32>
    %103 = arith.addf %100, %102 : vector<4x64xf32>
    %104 = vector.extract_strided_slice %93 {offsets = [4, 0], sizes = [12, 1], strides = [1, 1]} : vector<16x1xf32> to vector<12x1xf32>
    %105 = vector.broadcast %104 : vector<12x1xf32> to vector<12x64xf32>
    %106 = arith.mulf %91, %105 : vector<12x64xf32>
    %107 = vector.extract_strided_slice %95 {offsets = [4, 0], sizes = [12, 1], strides = [1, 1]} : vector<16x1xf32> to vector<12x1xf32>
    %108 = vector.broadcast %107 : vector<12x1xf32> to vector<12x64xf32>
    %109 = arith.addf %106, %108 : vector<12x64xf32>
    %cst_64 = arith.constant 0.000000e+00 : f32
    %110 = vector.broadcast %cst_64 : f32 to vector<4x64xf32>
    %111 = arith.cmpf oge, %103, %110 : vector<4x64xf32>
    %112 = vector.extract_strided_slice %97 {offsets = [0, 0], sizes = [4, 1], strides = [1, 1]} : vector<16x1xf32> to vector<4x1xf32>
    %113 = vector.broadcast %112 : vector<4x1xf32> to vector<4x64xf32>
    %114 = arith.mulf %113, %103 : vector<4x64xf32>
    %115 = arith.select %111, %103, %114 : vector<4x64xi1>, vector<4x64xf32>
    %c0_65 = arith.constant 0 : index
    %c0_66 = arith.constant 0 : index
    %c0_67 = arith.constant 0 : index
    %116 = vector.load %arg5[%c0_65, %c0_66, %c0_67] : memref<1x16x64xf32, #tpu.memory_space<vmem>>, vector<1x4x64xf32>
    %117 = vector.shape_cast %116 : vector<1x4x64xf32> to vector<4x64xf32>
    %118 = vector.shape_cast %115 : vector<4x64xf32> to vector<1x4x64xf32>
    tpu.vector_store %arg5[%c0_65, %c0_66, %c0_67], %118 {strides = array<i32>} : memref<1x16x64xf32, #tpu.memory_space<vmem>>, vector<1x4x64xf32>,
    %cst_68 = arith.constant 0.000000e+00 : f32
    %119 = vector.broadcast %cst_68 : f32 to vector<12x64xf32>
    %120 = arith.cmpf oge, %109, %119 : vector<12x64xf32>
    %121 = vector.extract_strided_slice %97 {offsets = [4, 0], sizes = [12, 1], strides = [1, 1]} : vector<16x1xf32> to vector<12x1xf32>
    %122 = vector.broadcast %121 : vector<12x1xf32> to vector<12x64xf32>
    %123 = arith.mulf %122, %109 : vector<12x64xf32>
    %124 = arith.select %120, %109, %123 : vector<12x64xi1>, vector<12x64xf32>
    %c0_69 = arith.constant 0 : index
    %c4_70 = arith.constant 4 : index
    %c0_71 = arith.constant 0 : index
    %125 = vector.load %arg5[%c0_69, %c4_70, %c0_71] : memref<1x16x64xf32, #tpu.memory_space<vmem>>, vector<1x12x64xf32>
    %126 = vector.shape_cast %125 : vector<1x12x64xf32> to vector<12x64xf32>
    %127 = vector.shape_cast %124 : vector<12x64xf32> to vector<1x12x64xf32>
    tpu.vector_store %arg5[%c0_69, %c4_70, %c0_71], %127 {strides = array<i32>} : memref<1x16x64xf32, #tpu.memory_space<vmem>>, vector<1x12x64xf32>,
    return
  }
  func.func @transform_0(%arg0: i32) -> (i32, i32, i32, i32) {
    %c0_i32 = arith.constant 0 : i32
    %c0_i32_0 = arith.constant 0 : i32
    %c0_i32_1 = arith.constant 0 : i32
    %c0_i32_2 = arith.constant 0 : i32
    return %arg0, %c0_i32, %c0_i32_0, %c0_i32_1 : i32, i32, i32, i32
  }
  func.func @transform_1(%arg0: i32) -> (i32, i32, i32) {
    %c0_i32 = arith.constant 0 : i32
    %c0_i32_0 = arith.constant 0 : i32
    %c0_i32_1 = arith.constant 0 : i32
    %c0_i32_2 = arith.constant 0 : i32
    return %c0_i32, %c0_i32_0, %c0_i32_1 : i32, i32, i32
  }
  func.func @transform_2(%arg0: i32) -> (i32, i32) {
    %c0_i32 = arith.constant 0 : i32
    %c0_i32_0 = arith.constant 0 : i32
    %c0_i32_1 = arith.constant 0 : i32
    return %c0_i32, %c0_i32_0 : i32, i32
  }
  func.func @transform_3(%arg0: i32) -> (i32, i32, i32) {
    %c0_i32 = arith.constant 0 : i32
    %c0_i32_0 = arith.constant 0 : i32
    %c0_i32_1 = arith.constant 0 : i32
    %c0_i32_2 = arith.constant 0 : i32
    return %c0_i32, %c0_i32_0, %c0_i32_1 : i32, i32, i32
  }
  func.func @transform_4(%arg0: i32) -> (i32, i32, i32) {
    %c0_i32 = arith.constant 0 : i32
    %c0_i32_0 = arith.constant 0 : i32
    %c0_i32_1 = arith.constant 0 : i32
    return %arg0, %c0_i32, %c0_i32_0 : i32, i32, i32
  }
}

</mosaic_0001>

<bundles_post_ra>
// kernel: initial_block_forward.3
= control target key start
LH: loop header
LB: loop body
LE: loop exit
PB: predicated region body
PF: predicated region fallthrough
CT: control target
= control target key end

     0   :  { %s847_s15 = smov 0   ;;  %s1013_s0 = inlined_call_operand.vmem [shape: f32[2,4,4,64], index: 0, kind: input, shape index: {}]   ;;  %s1014_s1 = inlined_call_operand.vmem [shape: f32[9,12,4], index: 1, kind: input, shape index: {}]   ;;  %s1015_s2 = inlined_call_operand.vmem [shape: f32[12,1], index: 2, kind: input, shape index: {}]   ;;  %s1016_s3 = inlined_call_operand.vmem [shape: f32[3,16,1], index: 3, kind: input, shape index: {}]   ;;  %s1017_s4 = inlined_call_operand.vmem [shape: f32[2,16,64], index: 4, kind: output, shape index: {}]  }
   0x1 LB: > { %s729_s16 = sadd.s32 4294967295, %s815_s15   ;;  %p733_p0 = scmp.ge.s32.totalorder %s815_s15, 1  ;;  %s815_s15 = sphi %s847_s15, %s14_s15  }
   0x2   : > { %p162_p1 = scmp.lt.s32.totalorder %s815_s15, 3 }
   0x4   : > { %p163_p2 = pnand %p733_p0, %p162_p1 }
   0x5   : > { %p188_p3 = scmp.lt.s32.totalorder (!%p163_p2), %s729_s16, 1  ;;  %s817_s21 = smov (!%p163_p2), 8  }
   0x6   : > { %166 = sbr.rel (%p163_p2) target bundleno = 318 (0x13e), region = 36  ;;  %s818_s22 = smov (!%p163_p2), 1  }
   0x7   : > { %s819_s23 = smov (!%p163_p2), 9  }
   0xb   : > { %s1019_s16 = smov (!%p188_p3, %s729_s16), 1  ;;  %v208_v3 = vlaneseq  ;;  %vm245_vm1 = vcmask 7168   ;;  %vm235_vm2 = vcmask 64512   ;;  %vm265_vm3 = vcmask 1043456   ;;  %v742_v10 = vld [vmem:[%s1014_s1 + $0x18] sm:$0xf] }
   0xc   : > { %s790_s17 = sshll.u32 %s1019_s16, 4  ;;  %v820_v6 = vmov 1.0   ;;  %vm258_vm4 = vcmask 31744   ;;  %v741_v11 = vld [vmem:[%s1014_s1 + $0x10] sm:$0xff]  ;;  %v580_v18 = vld [vmem:[%s1015_s2] sm:$0xff]  ;;  %v595_v20 = vld [vmem:[%s1016_s3 + $0x8] sm:$0xff] }
   0xd   : > { %s192_s20 = scalar_lea.vmem %s1013_s0, %s790_s17  ;;  %v209_v4 = vand.u32 127, %v208_v3  ;;  %v754_v17 = vld [vmem:[%s1014_s1 + $0x30] sm:$0xff]  ;;  %vm228_vm5 = vcmask 72704   ;;  %v821_v21 = vmov 0   ;;  %v594_v22 = vld [vmem:[%s1016_s3] sm:$0xff]  ;;  %v787_v40 = vld [vmem:[%s1016_s3 + $0x28] sm:$0xff]  ;;  %s999_s6 = scalar_lea.vmem %s1017_s4, %s790_s17 }
   0xe   : > { %v863_v0 = vld [vmem:[%s192_s20 + $0x8] sm:$0xf]  ;;  %v865_v1 = vld [vmem:[%s192_s20 + $0x4] sm:$0xf]  ;;  %v867_v2 = vld [vmem:[%s192_s20 + $0xc] sm:$0xf]  ;;  %808 = vset.pattern.permute.xlu1 %v821_v21  ;;  %807 = vset.pattern.permute.xlu0 %v821_v21 }
   0xf   : > { %232 = vrot.lane.b32.xlu0 %v863_v0, %s817_s21  ;;  %242 = vrot.lane.b32.xlu1 %v865_v1, %s818_s22  ;;  %v214_v5 = vand.u32 7, %v209_v4  ;;  %v882_v14 = vld [vmem:[%s192_s20] sm:$0xf]  ;;  %v755_v32 = vld [vmem:[%s1014_s1 + $0x38] sm:$0xf]  ;;  %v206_v49 = vmax.f32 %v863_v0, %v867_v2  ;;  %vm644_vm7 = vcmask 519168  }
  0x10   : > { %248 = vrot.lane.b32.xlu2 %v867_v2, %s818_s22  ;;  %v749_v25 = vld [vmem:[%s1014_s1 + $0x20] sm:$0xff]  ;;  %v784_v33 = vld [vmem:[%s1016_s3 + $0x10] sm:$0xff]  ;;  %v581_v35 = vld [vmem:[%s1015_s2 + $0x8] sm:$0xf]  ;;  %v205_v50 = vmax.f32 %v882_v14, %v865_v1  ;;  %vm671_vm9 = vcmask 523264  }
  0x11   : > { %vm222_vm0 = vcmp.eq.s32.totalorder %v214_v5, 0  ;;  %v759_v27 = vld [vmem:[%s1014_s1 + $0x40] sm:$0xff]  ;;  %806 = vset.pattern.permute.xlu2 %v821_v21  ;;  %v750_v36 = vld [vmem:[%s1014_s1 + $0x28] sm:$0xf]  ;;  %v774_v39 = vld [vmem:[%s1014_s1 + $0x70] sm:$0xff] }
  0x12   : > { %v223_v7 = vsel %vm222_vm0, 0.0, %v820_v6  ;;  %v253_v31 = vld [vmem:[%s1014_s1] sm:$0xff]  ;;  %v760_v37 = vld [vmem:[%s1014_s1 + $0x48] sm:$0xf]  ;;  %v785_v41 = vld [vmem:[%s1016_s3 + $0x18] sm:$0xff]  ;;  %v207_v52 = vmax.f32 %v205_v50, %v206_v49 }
  0x13   : > { %v786_v34 = vld [vmem:[%s1016_s3 + $0x20] sm:$0xff]  ;;  %v254_v38 = vld [vmem:[%s1014_s1 + $0x8] sm:$0xf]  ;;  %v764_v44 = vld [vmem:[%s1014_s1 + $0x50] sm:$0xff] }
  0x14   : > { %v769_v42 = vld [vmem:[%s1014_s1 + $0x60] sm:$0xff]  ;;  %v775_v45 = vld [vmem:[%s1014_s1 + $0x78] sm:$0xf]  ;;  %v770_v46 = vld [vmem:[%s1014_s1 + $0x68] sm:$0xf] }
  0x15   : > { %v779_v43 = vld [vmem:[%s1014_s1 + $0x80] sm:$0xff]  ;;  %v780_v47 = vld [vmem:[%s1014_s1 + $0x88] sm:$0xf]  ;;  %v765_v48 = vld [vmem:[%s1014_s1 + $0x58] sm:$0xf] }
  0x17   : > { %237 = vrot.lane.b32.xlu0 %v867_v2, %s817_s21  ;;  %225 = vrot.lane.b32.xlu1 %v867_v2, %s819_s23 }
  0x18   : > { %604 = vperm.xlu2 %806, %v594_v22  }
  0x1f   : > { %584 = vperm.xlu1 %808, %v580_v18   ;;  %616 = vperm.xlu0 %807, %v595_v20  }
  0x20   : > { %589 = vperm.xlu2 %806, %v581_v35  }
  0x27   : > { %610 = vperm.xlu1 %808, %v784_v33   ;;  %639 = vperm.xlu0 %807, %v786_v34  }
  0x28   : > { %627 = vperm.xlu2 %806, %v785_v41  }
  0x2f   : > { %650 = vperm.xlu1 %808, %v787_v40  }
  0x6a   : > { %v249_v16 = vpop.permute.xlu2 %248 }
  0x6b   : > { %v251_v19 = vsel %vm245_vm1, 0.0, %v249_v16 }
  0x6c   : > { %v252_v26 = vmul.f32 %v251_v19, %v223_v7 }
  0x72   : > { %v605_v54 = vpop.permute.xlu2 %604 }
  0x73   : > { %v607_v55 = vmul.f32 %v605_v54, %v207_v52 }
  0x81   : > { %v233_v8 = vpop.permute.xlu0 %232  ;;  %v243_v9 = vpop.permute.xlu1 %242 }
  0x82   : > { %v246_v12 = vsel %vm245_vm1, 0.0, %v243_v9  ;;  %v236_v13 = vsel %vm235_vm2, 0.0, %v233_v8 }
  0x83   : > { %792 = vmatpush.msk.msra.mxu1 %vm265_vm3, %v236_v13  ;;  %v247_v15 = vmul.f32 %v246_v12, %v223_v7  ;;  %743 = vmatpush.msk.msra.mxu0 %vm265_vm3, %v236_v13 }
  0x84   : > { %745 = vmatmul.msk.f32.vlgmr.msra.gmra.mxu1 %vm258_vm4, %v742_v10  ;;  %744 = vmatmul.msk.f32.vlgmr.msra.gmra.mxu0 %vm258_vm4, %v741_v11  ;;  %v590_v11 = vpop.permute.xlu2 %589 }
  0x85   : > { %756 = vmatpush.msk.msra.mxu3 %vm265_vm3, %v247_v15  ;;  %761 = vmatpush.msk.msrb.mxu0 %vm265_vm3, %v882_v14 }
  0x86   : > { %757 = vmatmul.msk.f32.vlgmr.msra.gmra.mxu3 %vm258_vm4, %v754_v17 }
  0x87   : > { %781 = vmatpush.msk.msra.mxu0 %vm265_vm3, %v867_v2  ;;  %776 = vmatpush.msk.msrb.mxu3 %vm265_vm3, %v863_v0 }
  0x89   : > { %v238_v23 = vpop.permute.xlu0 %237  ;;  %v226_v24 = vpop.permute.xlu1 %225 }
  0x8a   : > { %v229_v28 = vsel %vm228_vm5, 0.0, %v226_v24  ;;  %v240_v29 = vsel %vm235_vm2, 0.0, %v238_v23  ;;  %v618_v23 = vrot.slane %v605_v54, 4 }
  0x8b   : > { %v230_v30 = vmul.f32 %v229_v28, %v223_v7  ;;  %751 = vmatpush.msk.msra.mxu2 %vm265_vm3, %v240_v29 }
  0x8c   : > { %752 = vmatmul.msk.f32.vlgmr.msra.gmra.mxu2 %vm258_vm4, %v749_v25  ;;  %762 = vmatmul.msk.f32.vlgmr.msrb.gmra.mxu0 %vm258_vm4, %v759_v27  ;;  %v628_v27 = vpop.permute.xlu2 %627 }
  0x8d   : > { %746 = vmatpush.msk.msrb.mxu1 %vm265_vm3, %v230_v30  ;;  %771 = vmatpush.msk.msrb.mxu2 %vm265_vm3, %v252_v26  ;;  %v630_v33 = vrot.slane %v628_v27, 4 }
  0x8e   : > { %747 = vmatmul.msk.f32.vlgmr.msrb.gmra.mxu1 %vm258_vm4, %v253_v31  ;;  %758 = vmatmul.msk.f32.gmra.mxu3 %vm258_vm4, %v755_v32 }
  0x8f   : > { %766 = vmatpush.msk.msra.mxu1 %vm265_vm3, %v865_v1 }
  0x91   : > { %v585_v51 = vpop.permute.xlu1 %584  ;;  %v617_v53 = vpop.permute.xlu0 %616 }
  0x92   : > { %v619_v25 = vrot.slane %v617_v53, 4 }
  0x94   : > { %753 = vmatmul.msk.f32.gmra.mxu2 %vm258_vm4, %v750_v36  ;;  %763 = vmatmul.msk.f32.gmra.mxu0 %vm258_vm4, %v760_v37  ;;  %v620_v32 = vsel %vm265_vm3, %v618_v23, %v619_v25 }
  0x96   : > { %748 = vmatmul.msk.f32.gmra.mxu1 %vm258_vm4, %v254_v38  ;;  %777 = vmatmul.msk.f32.vlgmr.msrb.gmra.mxu3 %vm258_vm4, %v774_v39 }
  0x99   : > { %v611_v58 = vpop.permute.xlu1 %610  ;;  %v640_v60 = vpop.permute.xlu0 %639 }
  0x9a   : > { %v613_v59 = vadd.f32 %v611_v58, %v607_v55  ;;  %v629_v34 = vrot.slane %v611_v58, 4 }
  0x9c   : > { %772 = vmatmul.msk.f32.vlgmr.msrb.gmra.mxu2 %vm258_vm4, %v769_v42  ;;  %782 = vmatmul.msk.f32.vlgmr.msra.gmra.mxu0 %vm258_vm4, %v779_v43  ;;  %vm636_vm6 = vcmp.ge.f32.partialorder %v613_v59, 0.0  ;;  %v642_v61 = vmul.f32 %v640_v60, %v613_v59  ;;  %v631_v39 = vsel %vm265_vm3, %v629_v34, %v630_v33 }
  0x9e   : > { %767 = vmatmul.msk.f32.vlgmr.msra.gmra.mxu1 %vm258_vm4, %v764_v44  ;;  %778 = vmatmul.msk.f32.gmra.mxu3 %vm258_vm4, %v775_v45  ;;  %v643_v62 = vsel %vm636_vm6, %v613_v59, %v642_v61 }
  0x9f   : > { %645 = vst.msk [vmem:[%s999_s6] sm:$0xf] %vm644_vm7, %v643_v62 }
  0xa4   : > { %773 = vmatmul.msk.f32.gmra.mxu2 %vm258_vm4, %v770_v46  ;;  %783 = vmatmul.msk.f32.gmra.mxu0 %vm258_vm4, %v780_v47 }
  0xa6   : > { %768 = vmatmul.msk.f32.gmra.mxu1 %vm258_vm4, %v765_v48  ;;  %v651_v48 = vpop.permute.xlu1 %650 }
 0x101   : > { %v289_v56 = vpop.f32.mrf.mxu1  ;;  %v286_v57 = vpop.f32.mrf.mxu0 }
 0x109   : > { %v390_v63 = vpop.f32.mrf.mxu3  ;;  %v427_v1 = vpop.f32.mrf.mxu0 }
 0x10b   : > { %v318_v0 = vpop.f32.mrf.mxu1 }
 0x10c   : > { %v319_v3 = vadd.f32 %v318_v0, %v286_v57 }
 0x10f   : > { %v353_v2 = vpop.f32.mrf.mxu2 }
 0x110   : > { %v359_v6 = vadd.f32 %v353_v2, %v319_v3 }
 0x111   : > { %v393_v5 = vpop.f32.mrf.mxu3  ;;  %v430_v7 = vpop.f32.mrf.mxu0 }
 0x112   : > { %v396_v9 = vadd.f32 %v390_v63, %v359_v6 }
 0x113   : > { %v321_v4 = vpop.f32.mrf.mxu1 }
 0x114   : > { %v322_v10 = vadd.f32 %v321_v4, %v289_v56  ;;  %v433_v13 = vadd.f32 %v427_v1, %v396_v9 }
 0x117   : > { %v356_v8 = vpop.f32.mrf.mxu2 }
 0x118   : > { %v360_v14 = vadd.f32 %v356_v8, %v322_v10 }
 0x119   : > { %v536_v15 = vpop.f32.mrf.mxu3  ;;  %v572_v18 = vpop.f32.mrf.mxu0 }
 0x11a   : > { %v397_v19 = vadd.f32 %v393_v5, %v360_v14 }
 0x11b   : > { %v463_v12 = vpop.f32.mrf.mxu1 }
 0x11c   : > { %v469_v16 = vadd.f32 %v463_v12, %v433_v13  ;;  %v434_v24 = vadd.f32 %v430_v7, %v397_v19 }
 0x11f   : > { %v500_v17 = vpop.f32.mrf.mxu2 }
 0x120   : > { %v506_v20 = vadd.f32 %v500_v17, %v469_v16 }
 0x121   : > { %v539_v31 = vpop.f32.mrf.mxu3  ;;  %v575_v37 = vpop.f32.mrf.mxu0 }
 0x122   : > { %v542_v21 = vadd.f32 %v536_v15, %v506_v20 }
 0x123   : > { %v466_v22 = vpop.f32.mrf.mxu1 }
 0x124   : > { %v578_v26 = vadd.f32 %v572_v18, %v542_v21  ;;  %v470_v28 = vadd.f32 %v466_v22, %v434_v24 }
 0x126   : > { %v592_v29 = vadd.f32 %v585_v51, %v578_v26 }
 0x127   : > { %v503_v30 = vpop.f32.mrf.mxu2 }
 0x128   : > { %v507_v35 = vadd.f32 %v503_v30, %v470_v28  ;;  %v623_v36 = vmul.f32 %v620_v32, %v592_v29 }
 0x12a   : > { %v543_v38 = vadd.f32 %v539_v31, %v507_v35  ;;  %v634_v41 = vadd.f32 %v631_v39, %v623_v36 }
 0x12c   : > { %v579_v40 = vadd.f32 %v575_v37, %v543_v38  ;;  %v655_v44 = vrot.slane %v634_v41, 4  ;;  %vm646_vm10 = vcmp.ge.f32.partialorder %v634_v41, 0.0 }
 0x12e   : > { %v593_v42 = vadd.f32 %v590_v11, %v579_v40  ;;  %v660_v47 = vmul.f32 %v655_v44, %v640_v60 }
 0x130   : > { %v624_v43 = vmul.f32 %v619_v25, %v593_v42  ;;  %v664_v51 = vrot.slane %v660_v47, 4 }
 0x132   : > { %v635_v45 = vadd.f32 %v630_v33, %v624_v43 }
 0x134   : > { %v656_v46 = vrot.slane %v635_v45, 4  ;;  %vm647_vm8 = vcmp.ge.f32.partialorder %v635_v45, 0.0 }
 0x136   : > { %v657_v49 = vsel %vm265_vm3, %v655_v44, %v656_v46 }
 0x137   : > { %v661_v50 = vmul.f32 %v657_v49, %v651_v48 }
 0x139   : > { %v665_v52 = vrot.slane %v661_v50, 4 }
 0x13b   : > { %v666_v53 = vsel %vm265_vm3, %v664_v51, %v665_v52  ;;  %v670_v54 = vsel %vm647_vm8, %v635_v45, %v665_v52 }
 0x13c   : > { %v669_v55 = vsel %vm646_vm10, %v634_v41, %v666_v53  ;;  %673 = vst.msk [vmem:[%s999_s6 + $0xc] sm:$0xf] %vm644_vm7, %v670_v54 }
 0x13d   : > { %672 = vst.msk [vmem:[%s999_s6 + $0x4] sm:$0xff] %vm671_vm9, %v669_v55 }
 0x13e PF: > { %s14_s15 = sadd.s32 1, %s815_s15  }
 0x13f   : > { %p11_p4 = scmp.ge.s32.totalorder %s14_s15, 4  }
 0x141   :  { %13 = sbr.rel (!%p11_p4) target bundleno = 1 (0x1), region = 79 }

// kernel: initial_block_forward.2
= control target key start
LH: loop header
LB: loop body
LE: loop exit
PB: predicated region body
PF: predicated region fallthrough
CT: control target
= control target key end

     0   :  { %s932_s15 = smov 0   ;;  %s934_s16 = smov 0   ;;  %s1115_s0 = inlined_call_operand.vmem [shape: f32[2,4,4,64], index: 0, kind: input, shape index: {}]   ;;  %s1116_s1 = inlined_call_operand.vmem [shape: f32[9,12,4], index: 1, kind: input, shape index: {}]   ;;  %s1117_s2 = inlined_call_operand.vmem [shape: f32[12,1], index: 2, kind: input, shape index: {}]   ;;  %s1118_s3 = inlined_call_operand.vmem [shape: f32[2,16,1], index: 3, kind: output, shape index: {0}]   ;;  %s1119_s4 = inlined_call_operand.vmem [shape: f32[2,16,1], index: 4, kind: output, shape index: {1}]  }
   0x1   :  { %s936_s17 = smov 0  }
   0x2 LB: > { %s27_s18 = sadd.s32 1, %s895_s16  ;;  %p786_p0 = scmp.ge.s32.totalorder %s899_s17, 1  ;;  %s899_s17 = sphi %s936_s17, %s15_s17   ;;  %s895_s16 = sphi %s934_s16, %s1121_s16   ;;  %s891_s15 = sphi %s932_s15, %s1120_s15  }
   0x3   : > { %p29_p1 = scmp.ge.s32.totalorder %s27_s18, 2  ;;  %p181_p2 = scmp.lt.s32.totalorder %s899_s17, 3 }
   0x5   : > { %s1123_s18 = smov (%p29_p1, %s27_s18), 0  ;;  %p182_p3 = pnand %p786_p0, %p181_p2 }
   0x6   : > { %p214_p4 = scmp.lt.s32.totalorder (!%p182_p3), %s891_s15, 1  ;;  %s902_s29 = smov (!%p182_p3), 8  }
   0x7   : > { %185 = sbr.rel (%p182_p3) target bundleno = 442 (0x1ba), region = 32  ;;  %s903_s30 = smov (!%p182_p3), 1  }
   0x8   : > { %s904_s5 = smov (!%p182_p3), 9  }
   0xc   : > { %s1125_s15 = smov (!%p214_p4, %s891_s15), 1  ;;  %vm234_vm0 = vcmask 7168   ;;  %v901_v0 = vmov 0.0   ;;  %v249_v4 = vlaneseq  ;;  %vm276_vm2 = vcmask 64512   ;;  %v797_v10 = vld [vmem:[%s1116_s1 + $0x18] sm:$0xf] }
   0xd   : > { %s841_s19 = sshll.u32 %s1125_s15, 4  ;;  %vm306_vm3 = vcmask 1043456   ;;  %v905_v8 = vmov 1.0   ;;  %vm299_vm4 = vcmask 31744   ;;  %v796_v11 = vld [vmem:[%s1116_s1 + $0x10] sm:$0xff]  ;;  %v621_v21 = vld [vmem:[%s1117_s2] sm:$0xff] }
   0xe   : > { %s953_s22 = scalar_lea.vmem %s1115_s0, %s841_s19  ;;  %s958_s25 = scalar_lea.vmem %s1118_s3, %s841_s19  ;;  %v250_v5 = vand.u32 127, %v249_v4  ;;  %v809_v18 = vld [vmem:[%s1116_s1 + $0x30] sm:$0xff]  ;;  %v622_v20 = vld [vmem:[%s1117_s2 + $0x8] sm:$0xf]  ;;  %vm269_vm5 = vcmask 72704   ;;  %v906_v22 = vmov 0  }
   0xf   : > { %s963_s28 = scalar_lea.vmem %s1119_s4, %s841_s19  ;;  %236 = vst.msk [vmem:[%s958_s25 + $0x8] sm:$0xff] %vm234_vm0, %v901_v0  ;;  %v968_v1 = vld [vmem:[%s953_s22 + $0x8] sm:$0xf]  ;;  %v971_v2 = vld [vmem:[%s953_s22 + $0xc] sm:$0xf]  ;;  %876 = vset.pattern.permute.xlu0 %v906_v22  ;;  %v804_v24 = vld [vmem:[%s1116_s1 + $0x20] sm:$0xff]  ;;  %875 = vset.pattern.permute.xlu2 %v906_v22 }
  0x10   : > { %238 = vst.msk [vmem:[%s963_s28 + $0x8] sm:$0xff] %vm234_vm0, %v901_v0  ;;  %273 = vrot.lane.b32.xlu0 %v968_v1, %s902_s29  ;;  %v977_v3 = vld [vmem:[%s953_s22 + $0x4] sm:$0xf]  ;;  %289 = vrot.lane.b32.xlu2 %v971_v2, %s903_s30  ;;  %v255_v6 = vand.u32 7, %v250_v5  ;;  %vm639_vm6 = vcmask 523264   ;;  %vm635_vm7 = vcmask 519168  }
  0x11   : > { %235 = vst.msk [vmem:[%s958_s25] sm:$0xff] %vm234_vm0, %v901_v0  ;;  %283 = vrot.lane.b32.xlu1 %v977_v3, %s903_s30  ;;  %v995_v14 = vld [vmem:[%s953_s22] sm:$0xf]  ;;  %v810_v32 = vld [vmem:[%s1116_s1 + $0x38] sm:$0xf] }
  0x12   : > { %237 = vst.msk [vmem:[%s963_s28] sm:$0xff] %vm234_vm0, %v901_v0  ;;  %vm263_vm1 = vcmp.eq.s32.totalorder %v255_v6, 0  ;;  %v814_v26 = vld [vmem:[%s1116_s1 + $0x40] sm:$0xff]  ;;  %v805_v33 = vld [vmem:[%s1116_s1 + $0x28] sm:$0xf]  ;;  %v829_v36 = vld [vmem:[%s1116_s1 + $0x70] sm:$0xff] }
  0x13   : > { %v264_v9 = vsel %vm263_vm1, 0.0, %v905_v8  ;;  %v294_v31 = vld [vmem:[%s1116_s1] sm:$0xff]  ;;  %v815_v34 = vld [vmem:[%s1116_s1 + $0x48] sm:$0xf]  ;;  %v819_v39 = vld [vmem:[%s1116_s1 + $0x50] sm:$0xff] }
  0x14   : > { %v295_v35 = vld [vmem:[%s1116_s1 + $0x8] sm:$0xf]  ;;  %v824_v37 = vld [vmem:[%s1116_s1 + $0x60] sm:$0xff]  ;;  %v830_v40 = vld [vmem:[%s1116_s1 + $0x78] sm:$0xf] }
  0x15   : > { %v834_v38 = vld [vmem:[%s1116_s1 + $0x80] sm:$0xff]  ;;  %v825_v41 = vld [vmem:[%s1116_s1 + $0x68] sm:$0xf]  ;;  %v820_v43 = vld [vmem:[%s1116_s1 + $0x58] sm:$0xf] }
  0x16   : > { %v835_v42 = vld [vmem:[%s1116_s1 + $0x88] sm:$0xf] }
  0x18   : > { %278 = vrot.lane.b32.xlu0 %v971_v2, %s902_s29  ;;  %625 = vperm.xlu2 %875, %v621_v21  }
  0x19   : > { %266 = vrot.lane.b32.xlu1 %v971_v2, %s904_s5 }
  0x20   : > { %630 = vperm.xlu0 %876, %v622_v20  }
  0x6a   : > { %v290_v16 = vpop.permute.xlu2 %289 }
  0x6b   : > { %v292_v19 = vsel %vm234_vm0, 0.0, %v290_v16 }
  0x6c   : > { %v293_v25 = vmul.f32 %v292_v19, %v264_v9 }
  0x82   : > { %v274_v7 = vpop.permute.xlu0 %273 }
  0x83   : > { %v284_v12 = vpop.permute.xlu1 %283  ;;  %v277_v13 = vsel %vm276_vm2, 0.0, %v274_v7  ;;  %v626_v7 = vpop.permute.xlu2 %625 }
  0x84   : > { %v287_v15 = vsel %vm234_vm0, 0.0, %v284_v12  ;;  %844 = vmatpush.msk.msra.mxu1 %vm306_vm3, %v277_v13  ;;  %798 = vmatpush.msk.msra.mxu0 %vm306_vm3, %v277_v13  ;;  %v246_v12 = vmax.f32 %v995_v14, %v977_v3 }
  0x85   : > { %v288_v17 = vmul.f32 %v287_v15, %v264_v9  ;;  %800 = vmatmul.msk.f32.vlgmr.msra.gmra.mxu1 %vm299_vm4, %v797_v10  ;;  %799 = vmatmul.msk.f32.vlgmr.msra.gmra.mxu0 %vm299_vm4, %v796_v11  ;;  %v247_v11 = vmax.f32 %v968_v1, %v971_v2 }
  0x86   : > { %816 = vmatpush.msk.msrb.mxu0 %vm306_vm3, %v995_v14 }
  0x87   : > { %811 = vmatpush.msk.msra.mxu3 %vm306_vm3, %v288_v17 }
  0x88   : > { %836 = vmatpush.msk.msra.mxu0 %vm306_vm3, %v971_v2  ;;  %812 = vmatmul.msk.f32.vlgmr.msra.gmra.mxu3 %vm299_vm4, %v809_v18 }
  0x89   : > { %831 = vmatpush.msk.msrb.mxu3 %vm306_vm3, %v968_v1 }
  0x8a   : > { %v279_v23 = vpop.permute.xlu0 %278 }
  0x8b   : > { %v267_v27 = vpop.permute.xlu1 %266  ;;  %v281_v28 = vsel %vm276_vm2, 0.0, %v279_v23 }
  0x8c   : > { %v270_v29 = vsel %vm269_vm5, 0.0, %v267_v27  ;;  %806 = vmatpush.msk.msra.mxu2 %vm306_vm3, %v281_v28 }
  0x8d   : > { %v271_v30 = vmul.f32 %v270_v29, %v264_v9  ;;  %807 = vmatmul.msk.f32.vlgmr.msra.gmra.mxu2 %vm299_vm4, %v804_v24  ;;  %817 = vmatmul.msk.f32.vlgmr.msrb.gmra.mxu0 %vm299_vm4, %v814_v26  ;;  %v248_v24 = vmax.f32 %v246_v12, %v247_v11 }
  0x8e   : > { %826 = vmatpush.msk.msrb.mxu2 %vm306_vm3, %v293_v25 }
  0x8f   : > { %801 = vmatpush.msk.msrb.mxu1 %vm306_vm3, %v271_v30  ;;  %v646_v28 = vmul.f32 %v248_v24, %v248_v24 }
  0x90   : > { %802 = vmatmul.msk.f32.vlgmr.msrb.gmra.mxu1 %vm299_vm4, %v294_v31  ;;  %813 = vmatmul.msk.f32.gmra.mxu3 %vm299_vm4, %v810_v32  ;;  %v658_v32 = vld [vmem:[%s958_s25] sm:$0xff] }
  0x91   : > { %821 = vmatpush.msk.msra.mxu1 %vm306_vm3, %v977_v3  ;;  %v636_v3 = vsel %vm635_vm7, %v248_v24, 0.0  ;;  %v647_v29 = vsel %vm635_vm7, %v646_v28, 0.0 }
  0x92   : > { %v631_v25 = vpop.permute.xlu0 %630 }
  0x95   : > { %808 = vmatmul.msk.f32.gmra.mxu2 %vm299_vm4, %v805_v33  ;;  %818 = vmatmul.msk.f32.gmra.mxu0 %vm299_vm4, %v815_v34 }
  0x98   : > { %803 = vmatmul.msk.f32.gmra.mxu1 %vm299_vm4, %v295_v35  ;;  %832 = vmatmul.msk.f32.vlgmr.msrb.gmra.mxu3 %vm299_vm4, %v829_v36  ;;  %v659_v35 = vld [vmem:[%s958_s25 + $0x8] sm:$0xff] }
  0x9d   : > { %827 = vmatmul.msk.f32.vlgmr.msrb.gmra.mxu2 %vm299_vm4, %v824_v37  ;;  %837 = vmatmul.msk.f32.vlgmr.msra.gmra.mxu0 %vm299_vm4, %v834_v38 }
  0xa0   : > { %822 = vmatmul.msk.f32.vlgmr.msra.gmra.mxu1 %vm299_vm4, %v819_v39  ;;  %833 = vmatmul.msk.f32.gmra.mxu3 %vm299_vm4, %v830_v40 }
  0xa5   : > { %828 = vmatmul.msk.f32.gmra.mxu2 %vm299_vm4, %v825_v41  ;;  %838 = vmatmul.msk.f32.gmra.mxu0 %vm299_vm4, %v835_v42 }
  0xa8   : > { %823 = vmatmul.msk.f32.gmra.mxu1 %vm299_vm4, %v820_v43 }
 0x102   : > { %v327_v44 = vpop.f32.mrf.mxu0  ;;  %v330_v45 = vpop.f32.mrf.mxu1 }
 0x10a   : > { %v468_v47 = vpop.f32.mrf.mxu0 }
 0x10b   : > { %v431_v46 = vpop.f32.mrf.mxu3 }
 0x10d   : > { %v359_v48 = vpop.f32.mrf.mxu1 }
 0x10e   : > { %v360_v50 = vadd.f32 %v359_v48, %v327_v44  ;;  %v673_v44 = vld [vmem:[%s963_s28 + $0x8] sm:$0xff]  ;;  %v672_v48 = vld [vmem:[%s963_s28] sm:$0xff] }
 0x110   : > { %v394_v49 = vpop.f32.mrf.mxu2 }
 0x111   : > { %v400_v52 = vadd.f32 %v394_v49, %v360_v50 }
 0x112   : > { %v471_v54 = vpop.f32.mrf.mxu0 }
 0x113   : > { %v434_v51 = vpop.f32.mrf.mxu3  ;;  %v437_v56 = vadd.f32 %v431_v46, %v400_v52 }
 0x115   : > { %v362_v53 = vpop.f32.mrf.mxu1  ;;  %v474_v58 = vadd.f32 %v468_v47, %v437_v56 }
 0x116   : > { %v363_v57 = vadd.f32 %v362_v53, %v330_v45 }
 0x118   : > { %v397_v55 = vpop.f32.mrf.mxu2 }
 0x119   : > { %v401_v59 = vadd.f32 %v397_v55, %v363_v57 }
 0x11a   : > { %v613_v0 = vpop.f32.mrf.mxu0 }
 0x11b   : > { %v577_v61 = vpop.f32.mrf.mxu3  ;;  %v438_v4 = vadd.f32 %v434_v51, %v401_v59 }
 0x11d   : > { %v504_v60 = vpop.f32.mrf.mxu1  ;;  %v475_v8 = vadd.f32 %v471_v54, %v438_v4 }
 0x11e   : > { %v510_v62 = vadd.f32 %v504_v60, %v474_v58 }
 0x120   : > { %v541_v63 = vpop.f32.mrf.mxu2 }
 0x121   : > { %v547_v5 = vadd.f32 %v541_v63, %v510_v62 }
 0x122   : > { %v616_v21 = vpop.f32.mrf.mxu0 }
 0x123   : > { %v583_v6 = vadd.f32 %v577_v61, %v547_v5  ;;  %v580_v17 = vpop.f32.mrf.mxu3 }
 0x125   : > { %v507_v9 = vpop.f32.mrf.mxu1  ;;  %v619_v10 = vadd.f32 %v613_v0, %v583_v6 }
 0x126   : > { %v511_v13 = vadd.f32 %v507_v9, %v475_v8 }
 0x127   : > { %v633_v15 = vadd.f32 %v626_v7, %v619_v10 }
 0x128   : > { %v544_v16 = vpop.f32.mrf.mxu2 }
 0x129   : > { %v548_v18 = vadd.f32 %v544_v16, %v511_v13  ;;  %v640_v19 = vsel %vm639_vm6, %v633_v15, 0.0  ;;  %v650_v20 = vmul.f32 %v633_v15, %v633_v15 }
 0x12a   : > { %641 = vadd.xlane.f32.xlu1 %v640_v19 }
 0x12b   : > { %v584_v22 = vadd.f32 %v580_v17, %v548_v18  ;;  %v652_v23 = vsel %vm639_vm6, %v650_v20, 0.0 }
 0x12c   : > { %653 = vadd.xlane.f32.xlu0 %v652_v23 }
 0x12d   : > { %v620_v1 = vadd.f32 %v616_v21, %v584_v22 }
 0x12f   : > { %v634_v2 = vadd.f32 %v631_v25, %v620_v1 }
 0x131   : > { %v643_v14 = vsel %vm635_vm7, %v634_v2, 0.0  ;;  %v651_v26 = vmul.f32 %v634_v2, %v634_v2 }
 0x132   : > { %644 = vadd.xlane.f32.xlu2 %v643_v14  ;;  %637 = vadd.xlane.f32.xlu1 %v636_v3 }
 0x133   : > { %v655_v27 = vsel %vm635_vm7, %v651_v26, 0.0 }
 0x13a   : > { %656 = vadd.xlane.f32.xlu2 %v655_v27 }
 0x142   : > { %648 = vadd.xlane.f32.xlu2 %v647_v29 }
 0x19d   : > { %v642_v30 = vpop.xlane.xlu1 %641 }
 0x19e   : > { %v662_v31 = vrot.slane %v642_v30, 4 }
 0x19f   : > { %v654_v41 = vpop.xlane.xlu0 %653 }
 0x1a0   : > { %v676_v43 = vrot.slane %v654_v41, 4 }
 0x1a5   : > { %v645_v33 = vpop.xlane.xlu2 %644  ;;  %v638_v34 = vpop.xlane.xlu1 %637 }
 0x1a6   : > { %v663_v36 = vrot.slane %v645_v33, 4  ;;  %v667_v37 = vsel %vm306_vm3, %v638_v34, %v662_v31 }
 0x1a7   : > { %v668_v38 = vadd.f32 %v667_v37, %v658_v32 }
 0x1a8   : > { %v664_v39 = vsel %vm306_vm3, %v662_v31, %v663_v36 }
 0x1a9   : > { %v669_v40 = vadd.f32 %v664_v39, %v659_v35  ;;  %670 = vst.msk [vmem:[%s958_s25] sm:$0xff] %vm234_vm0, %v668_v38 }
 0x1ab   : > { %671 = vst.msk [vmem:[%s958_s25 + $0x8] sm:$0xff] %vm234_vm0, %v669_v40 }
 0x1ad   : > { %v657_v42 = vpop.xlane.xlu2 %656 }
 0x1ae   : > { %v677_v45 = vrot.slane %v657_v42, 4 }
 0x1b0   : > { %v678_v46 = vsel %vm306_vm3, %v676_v43, %v677_v45 }
 0x1b1   : > { %v683_v47 = vadd.f32 %v678_v46, %v673_v44 }
 0x1b3   : > { %685 = vst.msk [vmem:[%s963_s28 + $0x8] sm:$0xff] %vm234_vm0, %v683_v47 }
 0x1b5   : > { %v649_v49 = vpop.xlane.xlu2 %648 }
 0x1b6   : > { %v681_v50 = vsel %vm306_vm3, %v649_v49, %v676_v43 }
 0x1b7   : > { %v682_v51 = vadd.f32 %v681_v50, %v672_v48 }
 0x1b9   : > { %684 = vst.msk [vmem:[%s963_s28] sm:$0xff] %vm234_vm0, %v682_v51 }
 0x1ba PF: > { %s15_s17 = sadd.s32 1, %s899_s17   ;;  %s1120_s15 = smov %s895_s16 }
 0x1bb   : > { %p12_p5 = scmp.ge.s32.totalorder %s15_s17, 4   ;;  %s1121_s16 = smov %s1123_s18 }
 0x1bd   :  { %14 = sbr.rel (!%p12_p5) target bundleno = 2 (0x2), region = 89 }

</bundles_post_ra>
